<compile_context>
chip_gen: v6e
topology: v6e:2x2x1
jax: 0.10.0
libtpu: 0.0.40
codegen_flags: <defaults>
</compile_context>

<pallas_src>
import jax
import jax.numpy as jnp
from jax.experimental import pallas as pl
from jax.experimental.pallas import tpu as pltpu


# ------------------------------- kernel -------------------------------------


def ms_cam_kernel(x_ref, w1t_ref, b1_ref, w2t_ref, bias_ref, o_ref):
    """One (spatial-tile, batch) block of the local branch + gating.

    x_ref    : (1, C, T)    input tile, native dtype (C on sublanes, HW on lanes)
    w1t_ref  : (Ip, C)      conv1 weight, transposed (matmul dtype = x dtype)
    b1_ref   : (Ip, 1)      conv1 bias (f32)
    w2t_ref  : (C, Ip)      conv2 weight, transposed (matmul dtype)
    bias_ref : (1, C, 1)    fused per-batch bias = b2l + xg  (f32)
    o_ref    : (1, C, T)    output tile, native dtype
    """
    x = x_ref[0]                                                     # (C, T)

    # local branch: two 1x1 convs == two channel-contracted matmuls, f32 acc
    h = jnp.dot(w1t_ref[...], x, preferred_element_type=jnp.float32)
    h = jnp.maximum(h + b1_ref[...], 0.0).astype(w2t_ref.dtype)      # (Ip, T)
    xl = jnp.dot(w2t_ref[...], h, preferred_element_type=jnp.float32)  # (C, T) f32

    # gating: sigmoid(xl + (b2l + xg)) in f32, multiply in f32, cast once
    wei = jax.nn.sigmoid(xl + bias_ref[0])                           # (C, T) f32
    o_ref[0] = (x.astype(jnp.float32) * wei).astype(o_ref.dtype)


# ------------------------------- wrapper -------------------------------------


def _round_up(x, m):
    return ((x + m - 1) // m) * m


def _vmem_limit_bytes():
    """Scoped VMEM limit: half the physical VMEM, capped at 48 MiB (v7x-safe)."""
    try:
        cap = pltpu.get_tpu_info().vmem_capacity_bytes
    except Exception:
        cap = 64 * 1024 * 1024  # conservative (v7x per-TC VMEM)
    return int(min(cap // 2, 48 * 1024 * 1024))


def _choose_tile_hw(hw, c, ip, x_bytes, vmem_budget):
    """Pick the spatial (lane) tile from the *real* per-step VMEM footprint."""
    # bytes per spatial column (lane) live in one grid step:
    per_col = 2 * 2 * c * x_bytes          # x tile + out tile, double-buffered
    per_col += c * 3 * 4                   # xl, wei, x_f32 intermediates (f32)
    per_col += ip * (4 + x_bytes)          # h (f32 acc) + post-ReLU cast copy
    weights = 2 * c * ip * x_bytes + (ip + c) * 4
    budget = max(vmem_budget - weights - 2 * 1024 * 1024, 1 << 20)

    max_tile = max((budget // per_col) // 128 * 128, 128)
    if hw <= max_tile:
        return hw                          # single full-extent block, no waste
    n_tiles = pl.cdiv(hw, max_tile)
    return _round_up(pl.cdiv(hw, n_tiles), 128)


def ms_cam_pallas(x_nchw, params):
    """x_nchw: (N, C, H, W). params: (in,out)-shaped weight mats + (1,out) biases."""
    N, C, H, W = x_nchw.shape
    HW = H * W
    inter = params["w1l"].shape[1]
    Ip = _round_up(max(inter, 8), 8)

    dt = x_nchw.dtype
    mat_dtype = dt                         # matmul in the input dtype, f32 acc

    # ---- global branch + bias fusion: tiny, done in plain XLA (f32) ----------
    g = jnp.mean(x_nchw, axis=(2, 3), dtype=jnp.float32)              # (N, C)
    hg = jax.nn.relu(g @ params["w1g"] + params["b1g"])               # (N, inter)
    xg = hg @ params["w2g"] + params["b2g"]                           # (N, C)
    bias = (xg + params["b2l"]).astype(jnp.float32)[:, :, None]       # (N, C, 1)

    # ---- tiny local-branch weights: transpose + pad inter to sublane mult ----
    w1t = jnp.pad(params["w1l"].T, ((0, Ip - inter), (0, 0))).astype(mat_dtype)  # (Ip, C)
    b1 = jnp.pad(params["b1l"].reshape(-1), (0, Ip - inter))
    b1 = b1.astype(jnp.float32)[:, None]                                          # (Ip, 1)
    w2t = jnp.pad(params["w2l"].T, ((0, 0), (0, Ip - inter))).astype(mat_dtype)  # (C, Ip)

    # ---- NCHW-native view: (N, C, HW), HW on the lane axis (free reshape) ----
    x3 = x_nchw.reshape(N, C, HW)

    vmem_limit = _vmem_limit_bytes()
    TILE_HW = _choose_tile_hw(HW, C, Ip, jnp.dtype(dt).itemsize, vmem_limit)
    n_hw = pl.cdiv(HW, TILE_HW)
    grid = (n_hw, N)                       # larger axis first (v7x megacore)

    out = pl.pallas_call(
        ms_cam_kernel,
        out_shape=jax.ShapeDtypeStruct((N, C, HW), dt),
        grid=grid,
        in_specs=[
            pl.BlockSpec((1, C, TILE_HW), lambda t, b: (b, 0, t)),   # x tile
            pl.BlockSpec((Ip, C), lambda t, b: (0, 0)),              # w1^T (resident)
            pl.BlockSpec((Ip, 1), lambda t, b: (0, 0)),              # b1   (resident)
            pl.BlockSpec((C, Ip), lambda t, b: (0, 0)),              # w2^T (resident)
            pl.BlockSpec((1, C, 1), lambda t, b: (b, 0, 0)),         # fused bias
        ],
        out_specs=pl.BlockSpec((1, C, TILE_HW), lambda t, b: (b, 0, t)),
        compiler_params=pltpu.CompilerParams(
            dimension_semantics=("parallel", "parallel"),
            vmem_limit_bytes=vmem_limit,
        ),
    )(x3, w1t, b1, w2t, bias)

    return out.reshape(N, C, H, W)


# ------------------------------ reference ------------------------------------


def ms_cam_reference(x_nchw, params):
    """Pure-JAX f32 reference of the PyTorch forward (NCHW semantics)."""
    x = jnp.transpose(x_nchw, (0, 2, 3, 1)).astype(jnp.float32)  # NHWC

    def conv1x1(t, w, b):                     # w: (in, out), b: (1, out)
        return jnp.einsum("nhwc,co->nhwo", t, w) + b.reshape(1, 1, 1, -1)

    xl = conv1x1(jax.nn.relu(conv1x1(x, params["w1l"], params["b1l"])),
                 params["w2l"], params["b2l"])
    g = jnp.mean(x, axis=(1, 2), keepdims=True)
    xg = conv1x1(jax.nn.relu(conv1x1(g, params["w1g"], params["b1g"])),
                 params["w2g"], params["b2g"])
    out = x * jax.nn.sigmoid(xl + xg)
    return jnp.transpose(out, (0, 3, 1, 2)).astype(x_nchw.dtype)


def init_params(key, channels, r):
    inter = channels // r
    ks = jax.random.split(key, 8)
    scale = 0.1
    # weights stored as (in, out) so  y = x @ w + b  ==  Conv1x1(out, in) on NCHW
    return {
        "w1l": scale * jax.random.normal(ks[0], (channels, inter), jnp.float32),
        "b1l": scale * jax.random.normal(ks[1], (1, inter), jnp.float32),
        "w2l": scale * jax.random.normal(ks[2], (inter, channels), jnp.float32),
        "b2l": scale * jax.random.normal(ks[3], (1, channels), jnp.float32),
        "w1g": scale * jax.random.normal(ks[4], (channels, inter), jnp.float32),
        "b1g": scale * jax.random.normal(ks[5], (1, inter), jnp.float32),
        "w2g": scale * jax.random.normal(ks[6], (inter, channels), jnp.float32),
        "b2g": scale * jax.random.normal(ks[7], (1, channels), jnp.float32),
    }


if __name__ == "__main__":
    key = jax.random.PRNGKey(0)
    k_x, k_p = jax.random.split(key)

    N, C, H, W = 2, 16, 16, 16   # channels=16, r=4 -> inter_channels=4
    r = 4
    x = jax.random.normal(k_x, (N, C, H, W), jnp.float32)
    params = init_params(k_p, C, r)

    ref = jax.block_until_ready(ms_cam_reference(x, params))

    fwd = jax.jit(ms_cam_pallas)

    # f32 path: matmuls run in f32, so results should match the reference tightly.
    out_f32 = jax.block_until_ready(fwd(x, params))
    assert out_f32.shape == (N, C, H, W)
    assert jnp.allclose(out_f32, ref, atol=1e-5, rtol=1e-5), "f32 path mismatch"

    # bf16 input path: matmuls in bf16 (f32 acc), bf16-level tolerance.
    x_bf16 = x.astype(jnp.bfloat16)
    ref_bf16 = jax.block_until_ready(ms_cam_reference(x_bf16, params))
    out_bf16 = jax.block_until_ready(fwd(x_bf16, params))
    assert out_bf16.shape == (N, C, H, W)
    assert jnp.allclose(out_bf16.astype(jnp.float32), ref_bf16.astype(jnp.float32),
                        atol=3e-2, rtol=3e-2), "bf16 path mismatch"

    print("KERNEL_OK")
</pallas_src>

<mosaic_0001>
module attributes {stable_mosaic.version = 11 : i64} {
  func.func @ms_cam_kernel(%arg0: i32, %arg1: i32, %arg2: memref<1x16x256xf32, #tpu.memory_space<vmem>>, %arg3: memref<8x16xf32, #tpu.memory_space<vmem>>, %arg4: memref<8x1xf32, #tpu.memory_space<vmem>>, %arg5: memref<16x8xf32, #tpu.memory_space<vmem>>, %arg6: memref<1x16x1xf32, #tpu.memory_space<vmem>>, %arg7: memref<1x16x256xf32, #tpu.memory_space<vmem>>) attributes {dimension_semantics = [#tpu.dimension_semantics<parallel>, #tpu.dimension_semantics<parallel>], iteration_bounds = array<i64: 1, 2>, scalar_prefetch = 0 : i64, scratch_operands = 0 : i64, tpu.core_type = #tpu.core_type<tc>, window_params = [{transform_indices = @transform_0, window_bounds = array<i64: 1, 16, 256>}, {pipeline_mode = #tpu.pipeline_mode<synchronous>, transform_indices = @transform_1, window_bounds = array<i64: 8, 16>}, {pipeline_mode = #tpu.pipeline_mode<synchronous>, transform_indices = @transform_2, window_bounds = array<i64: 8, 1>}, {pipeline_mode = #tpu.pipeline_mode<synchronous>, transform_indices = @transform_3, window_bounds = array<i64: 16, 8>}, {transform_indices = @transform_4, window_bounds = array<i64: 1, 16, 1>}, {transform_indices = @transform_5, window_bounds = array<i64: 1, 16, 256>}]} {
    %c0 = arith.constant 0 : index
    %c0_0 = arith.constant 0 : index
    %c0_1 = arith.constant 0 : index
    %0 = vector.load %arg2[%c0, %c0_0, %c0_1] : memref<1x16x256xf32, #tpu.memory_space<vmem>>, vector<1x16x256xf32>
    %1 = vector.shape_cast %0 : vector<1x16x256xf32> to vector<16x256xf32>
    %c0_2 = arith.constant 0 : index
    %c0_3 = arith.constant 0 : index
    %2 = vector.load %arg3[%c0_2, %c0_3] : memref<8x16xf32, #tpu.memory_space<vmem>>, vector<8x16xf32>
    %cst = arith.constant dense<0.000000e+00> : vector<8x256xf32>
    %3 = tpu.matmul %2, %1, %cst {dimension_numbers = #tpu.dot_dimension_numbers<[1], [0], [0], [1], [0, 0, 1, 1], [], []>} : vector<8x16xf32>, vector<16x256xf32>, vector<8x256xf32> -> vector<8x256xf32>
    %c0_4 = arith.constant 0 : index
    %c0_5 = arith.constant 0 : index
    %4 = vector.load %arg4[%c0_4, %c0_5] : memref<8x1xf32, #tpu.memory_space<vmem>>, vector<8x1xf32>
    %5 = vector.broadcast %4 : vector<8x1xf32> to vector<8x256xf32>
    %6 = arith.addf %3, %5 : vector<8x256xf32>
    %cst_6 = arith.constant 0.000000e+00 : f32
    %7 = vector.broadcast %cst_6 : f32 to vector<8x256xf32>
    %8 = arith.maximumf %6, %7 : vector<8x256xf32>
    %c0_7 = arith.constant 0 : index
    %c0_8 = arith.constant 0 : index
    %9 = vector.load %arg5[%c0_7, %c0_8] : memref<16x8xf32, #tpu.memory_space<vmem>>, vector<16x8xf32>
    %cst_9 = arith.constant dense<0.000000e+00> : vector<16x256xf32>
    %10 = tpu.matmul %9, %8, %cst_9 {dimension_numbers = #tpu.dot_dimension_numbers<[1], [0], [0], [1], [0, 0, 1, 1], [], []>} : vector<16x8xf32>, vector<8x256xf32>, vector<16x256xf32> -> vector<16x256xf32>
    %c0_10 = arith.constant 0 : index
    %c0_11 = arith.constant 0 : index
    %c0_12 = arith.constant 0 : index
    %11 = vector.load %arg6[%c0_10, %c0_11, %c0_12] : memref<1x16x1xf32, #tpu.memory_space<vmem>>, vector<1x16x1xf32>
    %12 = vector.shape_cast %11 : vector<1x16x1xf32> to vector<16x1xf32>
    %13 = vector.broadcast %12 : vector<16x1xf32> to vector<16x256xf32>
    %14 = arith.addf %10, %13 : vector<16x256xf32>
    %15 = arith.negf %14 : vector<16x256xf32>
    %16 = math.exp %15 : vector<16x256xf32>
    %cst_13 = arith.constant 1.000000e+00 : f32
    %17 = vector.broadcast %cst_13 : f32 to vector<16x256xf32>
    %18 = arith.addf %17, %16 : vector<16x256xf32>
    %19 = arith.divf %17, %18 : vector<16x256xf32>
    %20 = arith.mulf %1, %19 : vector<16x256xf32>
    %c0_14 = arith.constant 0 : index
    %c0_15 = arith.constant 0 : index
    %c0_16 = arith.constant 0 : index
    %21 = vector.load %arg7[%c0_14, %c0_15, %c0_16] : memref<1x16x256xf32, #tpu.memory_space<vmem>>, vector<1x16x256xf32>
    %22 = vector.shape_cast %21 : vector<1x16x256xf32> to vector<16x256xf32>
    %23 = vector.shape_cast %20 : vector<16x256xf32> to vector<1x16x256xf32>
    tpu.vector_store %arg7[%c0_14, %c0_15, %c0_16], %23 {strides = array<i32>} : memref<1x16x256xf32, #tpu.memory_space<vmem>>, vector<1x16x256xf32>,
    return
  }
  func.func @transform_0(%arg0: i32, %arg1: i32) -> (i32, i32, i32) {
    %c0_i32 = arith.constant 0 : i32
    %c0_i32_0 = arith.constant 0 : i32
    return %arg1, %c0_i32, %arg0 : i32, i32, i32
  }
  func.func @transform_1(%arg0: i32, %arg1: i32) -> (i32, i32) {
    %c0_i32 = arith.constant 0 : i32
    %c0_i32_0 = arith.constant 0 : i32
    %c0_i32_1 = arith.constant 0 : i32
    return %c0_i32, %c0_i32_0 : i32, i32
  }
  func.func @transform_2(%arg0: i32, %arg1: i32) -> (i32, i32) {
    %c0_i32 = arith.constant 0 : i32
    %c0_i32_0 = arith.constant 0 : i32
    %c0_i32_1 = arith.constant 0 : i32
    return %c0_i32, %c0_i32_0 : i32, i32
  }
  func.func @transform_3(%arg0: i32, %arg1: i32) -> (i32, i32) {
    %c0_i32 = arith.constant 0 : i32
    %c0_i32_0 = arith.constant 0 : i32
    %c0_i32_1 = arith.constant 0 : i32
    return %c0_i32, %c0_i32_0 : i32, i32
  }
  func.func @transform_4(%arg0: i32, %arg1: i32) -> (i32, i32, i32) {
    %c0_i32 = arith.constant 0 : i32
    %c0_i32_0 = arith.constant 0 : i32
    %c0_i32_1 = arith.constant 0 : i32
    return %arg1, %c0_i32, %c0_i32_0 : i32, i32, i32
  }
  func.func @transform_5(%arg0: i32, %arg1: i32) -> (i32, i32, i32) {
    %c0_i32 = arith.constant 0 : i32
    %c0_i32_0 = arith.constant 0 : i32
    return %arg1, %c0_i32, %arg0 : i32, i32, i32
  }
}

</mosaic_0001>

<bundles_post_ra>
// kernel: ms_cam_pallas.1
= control target key start
LH: loop header
LB: loop body
LE: loop exit
PB: predicated region body
PF: predicated region fallthrough
CT: control target
= control target key end

     0   :  { %s724_s18 = smov 0   ;;  %s726_s19 = smov 0   ;;  %s792_s0 = inlined_call_operand.vmem [shape: f32[2,16,256], index: 0, kind: input, shape index: {}]   ;;  %s793_s1 = inlined_call_operand.vmem [shape: f32[8,16], index: 1, kind: input, shape index: {}]   ;;  %s794_s2 = inlined_call_operand.vmem [shape: f32[8,1], index: 2, kind: input, shape index: {}]   ;;  %s795_s3 = inlined_call_operand.vmem [shape: f32[16,8], index: 3, kind: input, shape index: {}]   ;;  %s796_s4 = inlined_call_operand.vmem [shape: f32[2,16,1], index: 4, kind: input, shape index: {}]   ;;  %s797_s5 = inlined_call_operand.vmem [shape: f32[2,16,256], index: 5, kind: output, shape index: {}]  }
   0x1   :  { %s728_s20 = smov 0  }
   0x2 LB: > { %s24_s21 = sadd.s32 1, %s686_s19  ;;  %p605_p0 = scmp.ge.s32.totalorder %s690_s20, 1  ;;  %s690_s20 = sphi %s728_s20, %s15_s20   ;;  %s686_s19 = sphi %s726_s19, %s799_s19   ;;  %s682_s18 = sphi %s724_s18, %s798_s18  }
   0x3   : > { %p25_p1 = scmp.ge.s32.totalorder %s24_s21, 2  ;;  %p218_p2 = scmp.lt.s32.totalorder %s690_s20, 3 }
   0x5   : > { %s801_s21 = smov (%p25_p1, %s24_s21), 0  ;;  %p219_p3 = pnand %p605_p0, %p218_p2 }
   0x6   : > { %p260_p4 = scmp.lt.s32.totalorder (!%p219_p3), %s682_s18, 1 }
   0x7   : > { %222 = sbr.rel (%p219_p3) target bundleno = 457 (0x1c9), region = 40 }
   0xc   : > { %v289_v0 = vld [vmem:[%s794_s2] sm:$0xff]  ;;  %v692_v1 = vmov 0.0   ;;  %v693_v2 = vmov 0   ;;  %s803_s18 = smov (!%p260_p4, %s682_s18), 1  ;;  %vm295_vm0 = vcmask 130048   ;;  %vm386_vm1 = vcmask 64512  }
   0xd   : > { %363 = vmatprep.mubr.f32.mxu0 %v692_v1  ;;  %650 = vset.pattern.permute.xlu0 %v693_v2  ;;  %s621_s24 = sshll.u32 %s803_s18, 5  ;;  %s622_s25 = sshll.u32 %s803_s18, 4  ;;  %v288_v8 = vld [vmem:[%s793_s1] sm:$0xff]  ;;  %v373_v18 = vld [vmem:[%s795_s3 + $0x8] sm:$0xff] }
   0xe   : > { %292 = vperm.xlu0 %650, %v289_v0   ;;  %457 = vmatprep.mubr.f32.mxu1 %v692_v1  ;;  %s267_s28 = scalar_lea.vmem %s792_s0, %s621_s24  ;;  %s273_s6 = scalar_lea.vmem %s796_s4, %s622_s25  ;;  %v372_v17 = vld [vmem:[%s795_s3] sm:$0xff] }
   0xf   : > { %651 = vset.pattern.permute.xlu1 %v693_v2  ;;  %v754_v3 = vld [vmem:[%s267_s28 + $0x18] sm:$0xff]  ;;  %v756_v4 = vld [vmem:[%s267_s28 + $0x10] sm:$0xff]  ;;  %v758_v5 = vld [vmem:[%s267_s28 + $0x8] sm:$0xff]  ;;  %s282_s15 = scalar_lea.vmem %s797_s5, %s621_s24 }
  0x10   : > { %327 = vmatprep.subr.mxu0 %v754_v3  ;;  %v284_v6 = vld [vmem:[%s267_s28] sm:$0xff]  ;;  %v375_v9 = vld [vmem:[%s273_s6 + $0x8] sm:$0xff] }
  0x11   : > { %v374_v7 = vld [vmem:[%s273_s6] sm:$0xff]  ;;  %328 = vmatpush1.msra.mxu0 %v756_v4  ;;  %383 = vperm.xlu1 %651, %v375_v9  }
  0x12   : > { %378 = vperm.xlu0 %650, %v374_v7   ;;  %329 = vmatprep.subr.mxu0 %v758_v5 }
  0x13   : > { %330 = vmatpush1.msra.mxu0 %v284_v6 }
  0x14   : > { %612 = vmatmul.mubr.msk.f32.vlgmr.msra.gmra.mxu0 %vm295_vm0, %v288_v8 }
  0x89   : > { %v293_v11 = vpop.permute.xlu0 %292 }
  0x8c   : > { %v384_v23 = vpop.permute.xlu1 %383 }
  0x8d   : > { %v379_v19 = vpop.permute.xlu0 %378 }
  0xd4   : > { %v365_v10 = vpop.f32.mrf.mxu0 }
  0xd5   : > { %v366_v12 = vadd.f32 %v365_v10, %v293_v11 }
  0xd6   : > { %v367_v13 = vpop.f32.mrf.mxu0 }
  0xd7   : > { %v368_v14 = vadd.f32 %v367_v13, %v293_v11  ;;  %v370_v16 = vmax.f32 %v366_v12, 0.0 }
  0xd9   : > { %v371_v15 = vmax.f32 %v368_v14, 0.0 }
  0xdb   : > { %423 = vmatprep.subr.mxu1 %v371_v15 }
  0xdc   : > { %424 = vmatpush1.msra.mxu1 %v370_v16 }
  0xdd   : > { %613 = vmatmul.mubr.msk.f32.vlgmr.msra.gmra.mxu1 %vm386_vm1, %v372_v17 }
  0xde   : > { %463 = vmatprep.mubr.f32.mxu1 %v692_v1 }
  0xe1   : > { %614 = vmatmul.mubr.msk.f32.gmra.mxu1 %vm386_vm1, %v373_v18 }
 0x19d   : > { %v459_v20 = vpop.f32.mrf.mxu1 }
 0x19e   : > { %v460_v21 = vadd.f32 %v459_v20, %v379_v19 }
 0x19f   : > { %v461_v22 = vpop.f32.mrf.mxu1 }
 0x1a0   : > { %v615_v24 = vmul.f32 -1.442695, %v460_v21  ;;  %v462_v25 = vadd.f32 %v461_v22, %v379_v19 }
 0x1a1   : > { %v465_v26 = vpop.f32.mrf.mxu1 }
 0x1a2   : > { %652 = vpow2.f32 %v615_v24  ;;  %v616_v27 = vmul.f32 -1.442695, %v462_v25  ;;  %v466_v28 = vadd.f32 %v465_v26, %v384_v23 }
 0x1a3   : > { %v467_v29 = vpop.f32.mrf.mxu1 }
 0x1a4   : > { %654 = vpow2.f32 %v616_v27  ;;  %v617_v30 = vmul.f32 -1.442695, %v466_v28  ;;  %v468_v31 = vadd.f32 %v467_v29, %v384_v23 }
 0x1a6   : > { %656 = vpow2.f32 %v617_v30  ;;  %v618_v32 = vmul.f32 -1.442695, %v468_v31 }
 0x1a8   : > { %658 = vpow2.f32 %v618_v32 }
 0x1af   : > { %v653_v33 = vpop.eup %652 }
 0x1b0   : > { %v482_v34 = vadd.f32 1.0, %v653_v33 }
 0x1b1   : > { %v655_v35 = vpop.eup %654 }
 0x1b2   : > { %660 = vrcp.f32 %v482_v34  ;;  %v483_v36 = vadd.f32 1.0, %v655_v35 }
 0x1b3   : > { %v657_v37 = vpop.eup %656 }
 0x1b4   : > { %662 = vrcp.f32 %v483_v36  ;;  %v484_v38 = vadd.f32 1.0, %v657_v37 }
 0x1b5   : > { %v659_v39 = vpop.eup %658 }
 0x1b6   : > { %664 = vrcp.f32 %v484_v38  ;;  %v485_v40 = vadd.f32 1.0, %v659_v39 }
 0x1b8   : > { %666 = vrcp.f32 %v485_v40 }
 0x1bf   : > { %v661_v41 = vpop.eup %660 }
 0x1c0   : > { %v494_v42 = vmul.f32 %v661_v41, %v284_v6 }
 0x1c1   : > { %v663_v43 = vpop.eup %662 }
 0x1c2   : > { %498 = vst [vmem:[%s282_s15] sm:$0xff] %v494_v42  ;;  %v495_v44 = vmul.f32 %v663_v43, %v758_v5 }
 0x1c3   : > { %v665_v45 = vpop.eup %664 }
 0x1c4   : > { %499 = vst [vmem:[%s282_s15 + $0x8] sm:$0xff] %v495_v44  ;;  %v496_v46 = vmul.f32 %v665_v45, %v756_v4 }
 0x1c5   : > { %v667_v47 = vpop.eup %666 }
 0x1c6   : > { %500 = vst [vmem:[%s282_s15 + $0x10] sm:$0xff] %v496_v46  ;;  %v497_v48 = vmul.f32 %v667_v47, %v754_v3 }
 0x1c8   : > { %501 = vst [vmem:[%s282_s15 + $0x18] sm:$0xff] %v497_v48 }
 0x1c9 PF: > { %s15_s20 = sadd.s32 1, %s690_s20   ;;  %s798_s18 = smov %s686_s19 }
 0x1ca   : > { %p12_p5 = scmp.ge.s32.totalorder %s15_s20, 4   ;;  %s799_s19 = smov %s801_s21 }
 0x1cc   :  { %14 = sbr.rel (!%p12_p5) target bundleno = 2 (0x2), region = 73 }

</bundles_post_ra>
